<compile_context>
chip_gen: v6e
topology: v6e:2x2x1
jax: 0.10.0
libtpu: 0.0.40
codegen_flags: <defaults>
</compile_context>

<pallas_src>
import functools

import jax
import jax.numpy as jnp
from jax.experimental import pallas as pl
from jax.experimental.pallas import tpu as pltpu


def _round_up(a, b):
    return ((a + b - 1) // b) * b


def _static_loss_kernel(x_ref, out_ref, *, d):
    """x_ref: (4*d, n_tile) f32 packed as [qa_lo(d rows), qa_hi, qb_lo, qb_hi].

    out_ref: (1, n_tile) f32 loss per box (boxes on lanes)."""
    n_tile = x_ref.shape[-1]

    qa_part = None
    qb_part = None
    cross = None
    bad = None   # 1.0 where some dimension has no overlap
    sq = None    # sum over dims of (qa_lo-qb_lo)^2 + (qa_hi-qb_hi)^2

    # d is tiny and static -> fully unroll; every op below is a full-width
    # (1, n_tile) VPU op, no cross-lane reductions.
    for i in range(d):
        qa_lo = x_ref[i:i + 1, :]
        qa_hi = x_ref[d + i:d + i + 1, :]
        qb_lo = x_ref[2 * d + i:2 * d + i + 1, :]
        qb_hi = x_ref[3 * d + i:3 * d + i + 1, :]

        ea = qa_hi - qa_lo
        eb = qb_hi - qb_lo
        ec = jnp.minimum(qa_hi, qb_hi) - jnp.maximum(qa_lo, qb_lo)
        nd = jnp.logical_or(qa_hi <= qb_lo, qb_hi <= qa_lo).astype(jnp.float32)
        dlo = qa_lo - qb_lo
        dhi = qa_hi - qb_hi
        s = dlo * dlo + dhi * dhi

        if i == 0:
            qa_part, qb_part, cross, bad, sq = ea, eb, ec, nd, s
        else:
            qa_part = qa_part * ea
            qb_part = qb_part * eb
            cross = cross * ec
            bad = jnp.maximum(bad, nd)
            sq = sq + s

    no_ovl = bad > 0.5

    # Overlap branch: (1.5*(qa-c)/qa + (qb-c)/qb)/2.5
    #               = (2.5 - c*(1.5/qa + 1/qb)) * 0.4    (divides -> reciprocals)
    inv_qa = pl.reciprocal(qa_part, approx=False)
    inv_qb = pl.reciprocal(qb_part, approx=False)
    overlap_loss = (2.5 - cross * (1.5 * inv_qa + inv_qb)) * 0.4

    # No-overlap branch: 2 + sum((qa - qb)^2) / dim_nums  (divide -> const mul)
    no_overlap_loss = 2.0 + sq * (1.0 / d)

    out_ref[...] = jnp.where(no_ovl, no_overlap_loss, overlap_loss)


def static_loss_batched(outputs, targets):
    """outputs, targets: (N, 2*D) flat [lows..., highs...] per box.

    Returns (N,) losses; loss_fun(qa=target_i, qb=output_i) per row."""
    qa = jnp.asarray(targets, jnp.float32)   # qa = target (PyTorch convention)
    qb = jnp.asarray(outputs, jnp.float32)   # qb = output
    n, two_d = qa.shape
    d = two_d // 2

    # Lane tiling: boxes on lanes, multiples of 128; cap the tile at 2048 lanes.
    n_tile = min(2048, _round_up(n, 128))
    n_pad = _round_up(n, n_tile)

    if n_pad != n:
        # Pad with harmless unit boxes (volume 1) so no Inf/NaN in padded lanes.
        pad_box = jnp.concatenate(
            [jnp.zeros((n_pad - n, d), jnp.float32),
             jnp.ones((n_pad - n, d), jnp.float32)], axis=1)
        qa = jnp.concatenate([qa, pad_box], axis=0)
        qb = jnp.concatenate([qb, pad_box], axis=0)

    # Pack everything into one (4*D, N_pad) array: D on sublanes, boxes on lanes.
    x = jnp.concatenate(
        [qa[:, :d].T, qa[:, d:].T, qb[:, :d].T, qb[:, d:].T], axis=0)

    out = pl.pallas_call(
        functools.partial(_static_loss_kernel, d=d),
        out_shape=jax.ShapeDtypeStruct((1, n_pad), jnp.float32),
        grid=(n_pad // n_tile,),
        in_specs=[pl.BlockSpec((4 * d, n_tile), lambda i: (0, i))],
        out_specs=pl.BlockSpec((1, n_tile), lambda i: (0, i)),
        compiler_params=pltpu.CompilerParams(
            dimension_semantics=("parallel",)),
    )(x)
    return out[0, :n]


def static_loss(output, target):
    """Matches StaticLoss.forward(output, target) == loss_fun(qa=target, qb=output)."""
    qb = jnp.asarray(output, jnp.float32).reshape(1, -1)
    qa = jnp.asarray(target, jnp.float32).reshape(1, -1)
    return static_loss_batched(qb, qa)[0]


def _static_loss_ref(output, target):
    """Pure-JAX reference (single box pair) for sanity checking."""
    qa = jnp.asarray(target, jnp.float32)
    qb = jnp.asarray(output, jnp.float32)
    d = qa.shape[0] // 2
    qa_lo, qa_hi = qa[:d], qa[d:]
    qb_lo, qb_hi = qb[:d], qb[d:]
    qa_part = jnp.prod(qa_hi - qa_lo)
    qb_part = jnp.prod(qb_hi - qb_lo)
    no_overlap = jnp.any(jnp.logical_or(qa_hi <= qb_lo, qb_hi <= qa_lo))
    cross = jnp.prod(jnp.minimum(qa_hi, qb_hi) - jnp.maximum(qa_lo, qb_lo))
    overlap_loss = (1.5 * (qa_part - cross) / qa_part
                    + (qb_part - cross) / qb_part) / 2.5
    no_overlap_loss = 2.0 + jnp.sum((qa - qb) ** 2) / d
    return jnp.where(no_overlap, no_overlap_loss, overlap_loss)


if __name__ == "__main__":
    N, D = 6, 4   # 6 box pairs, 4 spatial dims -> flat vectors of length 8
    key = jax.random.PRNGKey(0)
    k1, k2, k3, k4 = jax.random.split(key, 4)

    # Valid qa boxes (lows then strictly larger highs).
    qa_lo = jax.random.uniform(k1, (N, D), dtype=jnp.float32)
    qa_hi = qa_lo + jax.random.uniform(k2, (N, D), dtype=jnp.float32,
                                       minval=0.5, maxval=1.5)
    # qb boxes shifted by a range of offsets so both branches (overlap and
    # no-overlap) get exercised.
    qb_lo = qa_lo + jax.random.uniform(k3, (N, D), dtype=jnp.float32,
                                       minval=-0.5, maxval=2.0)
    qb_hi = qb_lo + jax.random.uniform(k4, (N, D), dtype=jnp.float32,
                                       minval=0.5, maxval=1.5)

    targets = jnp.concatenate([qa_lo, qa_hi], axis=1)   # qa
    outputs = jnp.concatenate([qb_lo, qb_hi], axis=1)   # qb

    # Batched kernel.
    losses = static_loss_batched(outputs, targets)
    jax.block_until_ready(losses)
    ref = jax.vmap(_static_loss_ref)(outputs, targets)
    assert jnp.allclose(losses, ref, rtol=1e-5, atol=1e-5), (losses, ref)

    # Module-equivalent single-box path.
    loss0 = static_loss(outputs[0], targets[0])
    jax.block_until_ready(loss0)
    assert jnp.allclose(loss0, ref[0], rtol=1e-5, atol=1e-5), (loss0, ref[0])

    print("KERNEL_OK")
</pallas_src>

<mosaic_0001>
module attributes {stable_mosaic.version = 11 : i64} {
  func.func @_static_loss_kernel(%arg0: i32, %arg1: memref<16x128xf32, #tpu.memory_space<vmem>>, %arg2: memref<1x128xf32, #tpu.memory_space<vmem>>) attributes {dimension_semantics = [#tpu.dimension_semantics<parallel>], iteration_bounds = array<i64: 1>, scalar_prefetch = 0 : i64, scratch_operands = 0 : i64, tpu.core_type = #tpu.core_type<tc>, window_params = [{transform_indices = @transform_0, window_bounds = array<i64: 16, 128>}, {transform_indices = @transform_1, window_bounds = array<i64: 1, 128>}]} {
    %c0 = arith.constant 0 : index
    %c0_0 = arith.constant 0 : index
    %0 = vector.load %arg1[%c0, %c0_0] : memref<16x128xf32, #tpu.memory_space<vmem>>, vector<1x128xf32>
    %c4 = arith.constant 4 : index
    %c0_1 = arith.constant 0 : index
    %1 = vector.load %arg1[%c4, %c0_1] : memref<16x128xf32, #tpu.memory_space<vmem>>, vector<1x128xf32>
    %c8 = arith.constant 8 : index
    %c0_2 = arith.constant 0 : index
    %2 = vector.load %arg1[%c8, %c0_2] : memref<16x128xf32, #tpu.memory_space<vmem>>, vector<1x128xf32>
    %c12 = arith.constant 12 : index
    %c0_3 = arith.constant 0 : index
    %3 = vector.load %arg1[%c12, %c0_3] : memref<16x128xf32, #tpu.memory_space<vmem>>, vector<1x128xf32>
    %4 = arith.subf %1, %0 : vector<1x128xf32>
    %5 = arith.subf %3, %2 : vector<1x128xf32>
    %6 = arith.minimumf %1, %3 : vector<1x128xf32>
    %7 = arith.maximumf %0, %2 : vector<1x128xf32>
    %8 = arith.subf %6, %7 : vector<1x128xf32>
    %9 = arith.cmpf ole, %1, %2 : vector<1x128xf32>
    %10 = arith.cmpf ole, %3, %0 : vector<1x128xf32>
    %11 = arith.ori %9, %10 : vector<1x128xi1>
    %12 = arith.extui %11 : vector<1x128xi1> to vector<1x128xi32>
    %13 = arith.sitofp %12 : vector<1x128xi32> to vector<1x128xf32>
    %14 = arith.subf %0, %2 : vector<1x128xf32>
    %15 = arith.subf %1, %3 : vector<1x128xf32>
    %16 = arith.mulf %14, %14 : vector<1x128xf32>
    %17 = arith.mulf %15, %15 : vector<1x128xf32>
    %18 = arith.addf %16, %17 : vector<1x128xf32>
    %c1 = arith.constant 1 : index
    %c0_4 = arith.constant 0 : index
    %19 = vector.load %arg1[%c1, %c0_4] : memref<16x128xf32, #tpu.memory_space<vmem>>, vector<1x128xf32>
    %c5 = arith.constant 5 : index
    %c0_5 = arith.constant 0 : index
    %20 = vector.load %arg1[%c5, %c0_5] : memref<16x128xf32, #tpu.memory_space<vmem>>, vector<1x128xf32>
    %c9 = arith.constant 9 : index
    %c0_6 = arith.constant 0 : index
    %21 = vector.load %arg1[%c9, %c0_6] : memref<16x128xf32, #tpu.memory_space<vmem>>, vector<1x128xf32>
    %c13 = arith.constant 13 : index
    %c0_7 = arith.constant 0 : index
    %22 = vector.load %arg1[%c13, %c0_7] : memref<16x128xf32, #tpu.memory_space<vmem>>, vector<1x128xf32>
    %23 = arith.subf %20, %19 : vector<1x128xf32>
    %24 = arith.subf %22, %21 : vector<1x128xf32>
    %25 = arith.minimumf %20, %22 : vector<1x128xf32>
    %26 = arith.maximumf %19, %21 : vector<1x128xf32>
    %27 = arith.subf %25, %26 : vector<1x128xf32>
    %28 = arith.cmpf ole, %20, %21 : vector<1x128xf32>
    %29 = arith.cmpf ole, %22, %19 : vector<1x128xf32>
    %30 = arith.ori %28, %29 : vector<1x128xi1>
    %31 = arith.extui %30 : vector<1x128xi1> to vector<1x128xi32>
    %32 = arith.sitofp %31 : vector<1x128xi32> to vector<1x128xf32>
    %33 = arith.subf %19, %21 : vector<1x128xf32>
    %34 = arith.subf %20, %22 : vector<1x128xf32>
    %35 = arith.mulf %33, %33 : vector<1x128xf32>
    %36 = arith.mulf %34, %34 : vector<1x128xf32>
    %37 = arith.addf %35, %36 : vector<1x128xf32>
    %38 = arith.mulf %4, %23 : vector<1x128xf32>
    %39 = arith.mulf %5, %24 : vector<1x128xf32>
    %40 = arith.mulf %8, %27 : vector<1x128xf32>
    %41 = arith.maximumf %13, %32 : vector<1x128xf32>
    %42 = arith.addf %18, %37 : vector<1x128xf32>
    %c2 = arith.constant 2 : index
    %c0_8 = arith.constant 0 : index
    %43 = vector.load %arg1[%c2, %c0_8] : memref<16x128xf32, #tpu.memory_space<vmem>>, vector<1x128xf32>
    %c6 = arith.constant 6 : index
    %c0_9 = arith.constant 0 : index
    %44 = vector.load %arg1[%c6, %c0_9] : memref<16x128xf32, #tpu.memory_space<vmem>>, vector<1x128xf32>
    %c10 = arith.constant 10 : index
    %c0_10 = arith.constant 0 : index
    %45 = vector.load %arg1[%c10, %c0_10] : memref<16x128xf32, #tpu.memory_space<vmem>>, vector<1x128xf32>
    %c14 = arith.constant 14 : index
    %c0_11 = arith.constant 0 : index
    %46 = vector.load %arg1[%c14, %c0_11] : memref<16x128xf32, #tpu.memory_space<vmem>>, vector<1x128xf32>
    %47 = arith.subf %44, %43 : vector<1x128xf32>
    %48 = arith.subf %46, %45 : vector<1x128xf32>
    %49 = arith.minimumf %44, %46 : vector<1x128xf32>
    %50 = arith.maximumf %43, %45 : vector<1x128xf32>
    %51 = arith.subf %49, %50 : vector<1x128xf32>
    %52 = arith.cmpf ole, %44, %45 : vector<1x128xf32>
    %53 = arith.cmpf ole, %46, %43 : vector<1x128xf32>
    %54 = arith.ori %52, %53 : vector<1x128xi1>
    %55 = arith.extui %54 : vector<1x128xi1> to vector<1x128xi32>
    %56 = arith.sitofp %55 : vector<1x128xi32> to vector<1x128xf32>
    %57 = arith.subf %43, %45 : vector<1x128xf32>
    %58 = arith.subf %44, %46 : vector<1x128xf32>
    %59 = arith.mulf %57, %57 : vector<1x128xf32>
    %60 = arith.mulf %58, %58 : vector<1x128xf32>
    %61 = arith.addf %59, %60 : vector<1x128xf32>
    %62 = arith.mulf %38, %47 : vector<1x128xf32>
    %63 = arith.mulf %39, %48 : vector<1x128xf32>
    %64 = arith.mulf %40, %51 : vector<1x128xf32>
    %65 = arith.maximumf %41, %56 : vector<1x128xf32>
    %66 = arith.addf %42, %61 : vector<1x128xf32>
    %c3 = arith.constant 3 : index
    %c0_12 = arith.constant 0 : index
    %67 = vector.load %arg1[%c3, %c0_12] : memref<16x128xf32, #tpu.memory_space<vmem>>, vector<1x128xf32>
    %c7 = arith.constant 7 : index
    %c0_13 = arith.constant 0 : index
    %68 = vector.load %arg1[%c7, %c0_13] : memref<16x128xf32, #tpu.memory_space<vmem>>, vector<1x128xf32>
    %c11 = arith.constant 11 : index
    %c0_14 = arith.constant 0 : index
    %69 = vector.load %arg1[%c11, %c0_14] : memref<16x128xf32, #tpu.memory_space<vmem>>, vector<1x128xf32>
    %c15 = arith.constant 15 : index
    %c0_15 = arith.constant 0 : index
    %70 = vector.load %arg1[%c15, %c0_15] : memref<16x128xf32, #tpu.memory_space<vmem>>, vector<1x128xf32>
    %71 = arith.subf %68, %67 : vector<1x128xf32>
    %72 = arith.subf %70, %69 : vector<1x128xf32>
    %73 = arith.minimumf %68, %70 : vector<1x128xf32>
    %74 = arith.maximumf %67, %69 : vector<1x128xf32>
    %75 = arith.subf %73, %74 : vector<1x128xf32>
    %76 = arith.cmpf ole, %68, %69 : vector<1x128xf32>
    %77 = arith.cmpf ole, %70, %67 : vector<1x128xf32>
    %78 = arith.ori %76, %77 : vector<1x128xi1>
    %79 = arith.extui %78 : vector<1x128xi1> to vector<1x128xi32>
    %80 = arith.sitofp %79 : vector<1x128xi32> to vector<1x128xf32>
    %81 = arith.subf %67, %69 : vector<1x128xf32>
    %82 = arith.subf %68, %70 : vector<1x128xf32>
    %83 = arith.mulf %81, %81 : vector<1x128xf32>
    %84 = arith.mulf %82, %82 : vector<1x128xf32>
    %85 = arith.addf %83, %84 : vector<1x128xf32>
    %86 = arith.mulf %62, %71 : vector<1x128xf32>
    %87 = arith.mulf %63, %72 : vector<1x128xf32>
    %88 = arith.mulf %64, %75 : vector<1x128xf32>
    %89 = arith.maximumf %65, %80 : vector<1x128xf32>
    %90 = arith.addf %66, %85 : vector<1x128xf32>
    %cst = arith.constant 5.000000e-01 : f32
    %91 = vector.broadcast %cst : f32 to vector<1x128xf32>
    %92 = arith.cmpf ogt, %89, %91 : vector<1x128xf32>
    %93 = tpu.reciprocal %86 : vector<1x128xf32> -> vector<1x128xf32>
    %94 = tpu.reciprocal %87 : vector<1x128xf32> -> vector<1x128xf32>
    %cst_16 = arith.constant 1.500000e+00 : f32
    %95 = vector.broadcast %cst_16 : f32 to vector<1x128xf32>
    %96 = arith.mulf %95, %93 : vector<1x128xf32>
    %97 = arith.addf %96, %94 : vector<1x128xf32>
    %98 = arith.mulf %88, %97 : vector<1x128xf32>
    %cst_17 = arith.constant 2.500000e+00 : f32
    %99 = vector.broadcast %cst_17 : f32 to vector<1x128xf32>
    %100 = arith.subf %99, %98 : vector<1x128xf32>
    %cst_18 = arith.constant 4.000000e-01 : f32
    %101 = vector.broadcast %cst_18 : f32 to vector<1x128xf32>
    %102 = arith.mulf %100, %101 : vector<1x128xf32>
    %cst_19 = arith.constant 2.500000e-01 : f32
    %103 = vector.broadcast %cst_19 : f32 to vector<1x128xf32>
    %104 = arith.mulf %90, %103 : vector<1x128xf32>
    %cst_20 = arith.constant 2.000000e+00 : f32
    %105 = vector.broadcast %cst_20 : f32 to vector<1x128xf32>
    %106 = arith.addf %105, %104 : vector<1x128xf32>
    %107 = arith.select %92, %106, %102 : vector<1x128xi1>, vector<1x128xf32>
    %c0_21 = arith.constant 0 : index
    %c0_22 = arith.constant 0 : index
    %108 = vector.load %arg2[%c0_21, %c0_22] : memref<1x128xf32, #tpu.memory_space<vmem>>, vector<1x128xf32>
    tpu.vector_store %arg2[%c0_21, %c0_22], %107 {strides = array<i32>} : memref<1x128xf32, #tpu.memory_space<vmem>>, vector<1x128xf32>,
    return
  }
  func.func @transform_0(%arg0: i32) -> (i32, i32) {
    %c0_i32 = arith.constant 0 : i32
    %c0_i32_0 = arith.constant 0 : i32
    return %c0_i32, %arg0 : i32, i32
  }
  func.func @transform_1(%arg0: i32) -> (i32, i32) {
    %c0_i32 = arith.constant 0 : i32
    %c0_i32_0 = arith.constant 0 : i32
    return %c0_i32, %arg0 : i32, i32
  }
}

</mosaic_0001>

<bundles_post_ra>
// kernel: tpu_custom_call.1
= control target key start
LH: loop header
LB: loop body
LE: loop exit
PB: predicated region body
PF: predicated region fallthrough
CT: control target
= control target key end

     0   :  { %6 = vsyncpa [#allocation3], 0  ;;  %s227_s0 = inlined_call_operand.hbm [shape: f32[16,128], index: 0, kind: input, shape index: {}]   ;;  %s228_s1 = inlined_call_operand.hbm [shape: f32[1,128], index: 1, kind: output, shape index: {}]  }
   0x1   :  { %7 = vsyncpa [#allocation4], 0  ;;  %s198_s6 = smov [#allocation2]  }
   0x2   :  { %s13_s7 = sshll.u32 %s198_s6, 4  ;;  %s14_s7 = int_to_ptr.vmem [resolvable:$true] %s13_s7 }
   0x3   :  { %s162_s8 = scalar_lea.vmem %s14_s7, 256  ;;  %p167_p1 = scmp.lt.s32.totalorder %s14_s7, %s14_s7 }
   0x4   :  { %p163_p0 = scmp.ne.s32.totalorder %s14_s7, %s162_s8  ;;  %p168_p2 = scmp.lt.s32.totalorder %s162_s8, %s162_s8 }
   0x6   :  { %p169_p3 = por %p168_p2, %p167_p1 }
   0x8   :  { %p170_p4 = pnand %p169_p3, %p163_p0 }
   0xa   :  { %173 = shalt.err (!%p170_p4)
}
   0xb   :  { %s199_s9 = smov 128   ;;  %s200_s10 = smov 8  }
   0xc   :  { %19 = dma.hbm_to_vmem [thread:$0]  %s227_s0, 256, %s14_s7, [#allocation3], %s199_s9, %s199_s9, %s200_s10  }
   0xd   :  { %194 = dma.done.wait [#allocation3], 256  }
   0xe   :  { %195 = vsyncadd [#allocation3], 4294967040  ;;  %v23_v0 = vld [vmem:[#allocation2] sm:$0x1]  ;;  %v24_v1 = vld [vmem:[#allocation2 + $0x4] sm:$0x1] }
   0xf   :  { %v25_v2 = vld [vmem:[#allocation2 + $0x8] sm:$0x1]  ;;  %v26_v3 = vld [vmem:[#allocation2 + $0xc] sm:$0x1]  ;;  %v42_v4 = vld [vmem:[#allocation2 + $0x1] sm:$0x1]  ;;  %v27_v8 = vsub.f32 %v24_v1, %v23_v0 }
  0x10   :  { %v43_v5 = vld [vmem:[#allocation2 + $0x5] sm:$0x1]  ;;  %v44_v6 = vld [vmem:[#allocation2 + $0x9] sm:$0x1]  ;;  %v45_v7 = vld [vmem:[#allocation2 + $0xd] sm:$0x1]  ;;  %v28_v9 = vsub.f32 %v26_v3, %v25_v2  ;;  %v37_v16 = vsub.f32 %v23_v0, %v25_v2  ;;  %v38_v17 = vsub.f32 %v24_v1, %v26_v3  ;;  %v30_v37 = vmax.f32 %v23_v0, %v25_v2 }
  0x11   :  { %v46_v10 = vsub.f32 %v43_v5, %v42_v4  ;;  %v47_v11 = vsub.f32 %v45_v7, %v44_v6  ;;  %v216_v12 = vld [vmem:[#allocation2 + $0x2] sm:$0x1]  ;;  %v67_v13 = vld [vmem:[#allocation2 + $0x6] sm:$0x1]  ;;  %v68_v14 = vld [vmem:[#allocation2 + $0xa] sm:$0x1]  ;;  %v56_v21 = vsub.f32 %v42_v4, %v44_v6  ;;  %v57_v22 = vsub.f32 %v43_v5, %v45_v7 }
  0x12   :  { %v69_v15 = vld [vmem:[#allocation2 + $0xe] sm:$0x1]  ;;  %v70_v20 = vsub.f32 %v67_v13, %v216_v12  ;;  %v90_v24 = vld [vmem:[#allocation2 + $0x3] sm:$0x1]  ;;  %v91_v25 = vld [vmem:[#allocation2 + $0x7] sm:$0x1]  ;;  %v39_v28 = vmul.f32 %v37_v16, %v37_v16  ;;  %v40_v29 = vmul.f32 %v38_v17, %v38_v17  ;;  %v80_v35 = vsub.f32 %v216_v12, %v68_v14 }
  0x13   :  { %v61_v18 = vmul.f32 %v46_v10, %v27_v8  ;;  %v62_v19 = vmul.f32 %v47_v11, %v28_v9  ;;  %v71_v23 = vsub.f32 %v69_v15, %v68_v14  ;;  %v92_v26 = vld [vmem:[#allocation2 + $0xb] sm:$0x1]  ;;  %v93_v27 = vld [vmem:[#allocation2 + $0xf] sm:$0x1]  ;;  %v94_v32 = vsub.f32 %v91_v25, %v90_v24  ;;  %s202_s0 = smov [#allocation5]  }
  0x14   :  { %v58_v33 = vmul.f32 %v56_v21, %v56_v21  ;;  %v59_v34 = vmul.f32 %v57_v22, %v57_v22  ;;  %v95_v36 = vsub.f32 %v93_v27, %v92_v26  ;;  %v81_v38 = vsub.f32 %v67_v13, %v69_v15  ;;  %s132_s13 = sshll.u32 %s202_s0, 4  ;;  %s133_s13 = int_to_ptr.vmem [resolvable:$true] %s132_s13 }
  0x15   :  { %v85_v30 = vmul.f32 %v70_v20, %v61_v18  ;;  %v86_v31 = vmul.f32 %v71_v23, %v62_v19  ;;  %v29_v39 = vmin.f32 %v24_v1, %v26_v3  ;;  %vm32_vm0 = vcmp.le.f32.partialorder %v24_v1, %v25_v2  ;;  %s174_s14 = scalar_lea.vmem %s133_s13, 16  ;;  %s178_s15 = scalar_lea.vmem %s133_s13, 32 }
  0x16   :  { %vm33_vm1 = vcmp.le.f32.partialorder %v26_v3, %v23_v0  ;;  %v48_v40 = vmin.f32 %v43_v5, %v45_v7  ;;  %v49_v41 = vmax.f32 %v42_v4, %v44_v6  ;;  %vm51_vm2 = vcmp.le.f32.partialorder %v43_v5, %v44_v6  ;;  %p175_p5 = scmp.ne.s32.totalorder %s133_s13, %s174_s14  ;;  %p179_p6 = scmp.lt.s32.totalorder %s133_s13, %s133_s13 }
  0x17   :  { %v109_v42 = vmul.f32 %v94_v32, %v85_v30  ;;  %v110_v43 = vmul.f32 %v95_v36, %v86_v31  ;;  %v41_v44 = vadd.f32 %v40_v29, %v39_v28  ;;  %vm52_vm3 = vcmp.le.f32.partialorder %v45_v7, %v42_v4  ;;  %vm34_vm4 = vmor %vm32_vm0, %vm33_vm1  ;;  %p180_p7 = scmp.lt.s32.totalorder %s178_s15, %s174_s14 }
  0x18   :  { %v60_v45 = vadd.f32 %v59_v34, %v58_v33  ;;  %v82_v46 = vmul.f32 %v80_v35, %v80_v35  ;;  %v83_v47 = vmul.f32 %v81_v38, %v81_v38  ;;  %v104_v48 = vsub.f32 %v90_v24, %v92_v26  ;;  %vm53_vm5 = vmor %vm51_vm2, %vm52_vm3 }
  0x19   :  { %v105_v49 = vsub.f32 %v91_v25, %v93_v27  ;;  %150 = vrcp.f32 %v109_v42  ;;  %v31_v50 = vsub.f32 %v29_v39, %v30_v37  ;;  %v50_v51 = vsub.f32 %v48_v40, %v49_v41  ;;  %p181_p8 = por %p180_p7, %p179_p6 }
  0x1a   :  { %152 = vrcp.f32 %v110_v43  ;;  %v72_v52 = vmin.f32 %v67_v13, %v69_v15  ;;  %v73_v53 = vmax.f32 %v216_v12, %v68_v14  ;;  %vm75_vm6 = vcmp.le.f32.partialorder %v67_v13, %v68_v14 }
  0x1b   :  { %vm76_vm7 = vcmp.le.f32.partialorder %v69_v15, %v216_v12  ;;  %v65_v54 = vadd.f32 %v60_v45, %v41_v44  ;;  %v84_v55 = vadd.f32 %v83_v47, %v82_v46  ;;  %v106_v56 = vmul.f32 %v104_v48, %v104_v48  ;;  %p182_p9 = pnand %p181_p8, %p175_p5 }
  0x1c   :  { %v107_v57 = vmul.f32 %v105_v49, %v105_v49  ;;  %v201_v58 = vmov 0.0   ;;  %v63_v61 = vmul.f32 %v50_v51, %v31_v50  ;;  %v74_v62 = vsub.f32 %v72_v52, %v73_v53  ;;  %vm77_vm8 = vmor %vm75_vm6, %vm76_vm7 }
  0x1d   :  { %v141_v59 = vsel %vm34_vm4, 1.0, %v201_v58  ;;  %v142_v60 = vsel %vm53_vm5, 1.0, %v201_v58  ;;  %v96_v63 = vmin.f32 %v91_v25, %v93_v27  ;;  %v97_v0 = vmax.f32 %v90_v24, %v92_v26 }
  0x1e   :  { %v89_v1 = vadd.f32 %v84_v55, %v65_v54  ;;  %vm99_vm9 = vcmp.le.f32.partialorder %v91_v25, %v92_v26  ;;  %vm100_vm10 = vcmp.le.f32.partialorder %v93_v27, %v90_v24  ;;  %v108_v2 = vadd.f32 %v107_v57, %v106_v56 }
  0x1f   :  { %v64_v3 = vmax.f32 %v141_v59, %v142_v60  ;;  %v143_v4 = vsel %vm77_vm8, 1.0, %v201_v58  ;;  %v87_v5 = vmul.f32 %v74_v62, %v63_v61  ;;  %v98_v6 = vsub.f32 %v96_v63, %v97_v0  ;;  %vm101_vm11 = vmor %vm99_vm9, %vm100_vm10 }
  0x20   :  { %v113_v7 = vadd.f32 %v108_v2, %v89_v1  ;;  %v144_v11 = vsel %vm101_vm11, 1.0, %v201_v58 }
  0x21   :  { %v88_v9 = vmax.f32 %v64_v3, %v143_v4  ;;  %v111_v12 = vmul.f32 %v98_v6, %v87_v5 }
  0x22   :  { %v122_v15 = vmul.f32 0.25, %v113_v7 }
  0x23   :  { %v112_v16 = vmax.f32 %v88_v9, %v144_v11 }
  0x24   :  { %v123_v19 = vadd.f32 2.0, %v122_v15 }
  0x25   :  { %vm114_vm12 = vcmp.gt.f32.partialorder %v112_v16, 0.5 }
  0x26   :  { %v151_v8 = vpop.eup %150 }
  0x27   :  { %v153_v10 = vpop.eup %152  ;;  %v117_v13 = vmul.f32 1.5, %v151_v8 }
  0x29   :  { %v118_v14 = vadd.f32 %v153_v10, %v117_v13 }
  0x2b   :  { %v119_v17 = vmul.f32 %v118_v14, %v111_v12 }
  0x2d   :  { %v120_v18 = vsub.f32 2.5, %v119_v17 }
  0x2f   :  { %v121_v20 = vmul.f32 0.4, %v120_v18 }
  0x31   :  { %v124_v21 = vsel %vm114_vm12, %v123_v19, %v121_v20 }
  0x32   :  { %125 = vst [vmem:[#allocation5] sm:$0x1] %v124_v21 }
  0x33   :  { %185 = shalt.err (!%p182_p9)
}
  0x34   :  { %135 = dma.vmem_to_hbm [thread:$0]  %s133_s13, 16, %s228_s1, [#allocation4]  }
  0x35   :  { %196 = dma.done.wait [#allocation4], 16  }
  0x36   :  { %197 = vsyncadd [#allocation4], 4294967280 }
  0x37   :  { %139 = vsyncpa [#allocation3], 1 }
  0x38   :  { %140 = vsyncpa [#allocation4], 1 }

</bundles_post_ra>
